<compile_context>
chip_gen: v5e
topology: v5e:2x2
jax: 0.10.0
libtpu: 0.0.40
codegen_flags: <defaults>
</compile_context>

<pallas_src>
import functools

import jax
import jax.numpy as jnp
from jax.experimental import pallas as pl
from jax.experimental.pallas import tpu as pltpu

LANE = 128  # TPU lane width: last-dim alignment for lane-dense vregs / MXU.


def _round_up(n, m):
    return pl.cdiv(n, m) * m


def _pad_to(a, shape):
    return jnp.pad(a, [(0, t - s) for s, t in zip(a.shape, shape)])


def gcn_kernel(adj_ref, x_ref, wt_ref, b_ref, o_ref):
    """One row-tile of:  out = A @ (x @ W^T) + b  (reassociated linear-first)."""
    # Linear first: (N_pad, Fin_pad) @ (Fin_pad, Fout_pad) -> MXU, f32 acc.
    xw = jnp.dot(x_ref[...], wt_ref[...], preferred_element_type=jnp.float32)
    # Neighborhood sum for this row tile: (tile_n, N_pad) @ (N_pad, Fout_pad).
    # Bias added exactly once per output element (no reduction grid axis).
    h = jnp.dot(adj_ref[...], xw, preferred_element_type=jnp.float32) + b_ref[...]
    o_ref[...] = h.astype(o_ref.dtype)


def init_gcn_params(w, b):
    """Hoisted per-layer prep: transpose / cast / zero-pad W and b ONCE."""
    out_feats, in_feats = w.shape
    fin_pad = _round_up(in_feats, LANE)
    fout_pad = _round_up(out_feats, LANE)
    wt_p = _pad_to(jnp.asarray(w, jnp.float32).T, (fin_pad, fout_pad))
    b_p = _pad_to(jnp.asarray(b, jnp.float32).reshape(1, out_feats), (1, fout_pad))
    return jax.device_put(wt_p), jax.device_put(b_p)


def init_adjacency(adj):
    """Hoisted graph prep: cast + zero-pad the dense adjacency ONCE.

    N is padded to the lane width (128) so adj's lane dim and the aggregation
    contraction dim are lane-dense; zero padding is exact.
    """
    n = adj.shape[0]
    n_pad = _round_up(n, LANE)
    return jax.device_put(_pad_to(jnp.asarray(adj, jnp.float32), (n_pad, n_pad)))


def gcn_forward_padded(adj_p, x_p, wt_p, b_p, *, tile_n=128):
    """Padded-domain forward: (n_pad, fin_pad) -> (n_pad, fout_pad)."""
    n_pad = adj_p.shape[0]
    fin_pad, fout_pad = wt_p.shape
    tile_n = min(tile_n, n_pad)
    grid = (n_pad // tile_n,)

    flops = 2 * n_pad * fin_pad * fout_pad + 2 * n_pad * n_pad * fout_pad
    bytes_accessed = 4 * (adj_p.size + x_p.size + wt_p.size + b_p.size
                          + n_pad * fout_pad)

    return pl.pallas_call(
        gcn_kernel,
        out_shape=jax.ShapeDtypeStruct((n_pad, fout_pad), jnp.float32),
        grid=grid,
        in_specs=[
            pl.BlockSpec((tile_n, n_pad), lambda i: (i, 0)),       # adj row tile
            pl.BlockSpec((n_pad, fin_pad), lambda i: (0, 0)),      # features (full)
            pl.BlockSpec((fin_pad, fout_pad), lambda i: (0, 0)),   # W^T (full)
            pl.BlockSpec((1, fout_pad), lambda i: (0, 0)),         # bias row
        ],
        out_specs=pl.BlockSpec((tile_n, fout_pad), lambda i: (i, 0)),
        compiler_params=pltpu.CompilerParams(
            dimension_semantics=("parallel",),          # megacore on v7x
            vmem_limit_bytes=32 * 1024 * 1024,          # explicit budget (covers v5e default)
            allow_input_fusion=[True, True, True, True],
        ),
        cost_estimate=pl.CostEstimate(
            flops=flops, transcendentals=0, bytes_accessed=bytes_accessed),
    )(adj_p, x_p, wt_p, b_p)


@functools.partial(jax.jit, static_argnames=("n", "out_feats"))
def gcn_layer(adj_p, x, wt_p, b_p, *, n, out_feats):
    """Forward pass. Takes pre-padded adjacency/params; pads only the features."""
    n_pad = adj_p.shape[0]
    fin_pad = wt_p.shape[0]
    x_p = _pad_to(jnp.asarray(x, jnp.float32), (n_pad, fin_pad))
    out_p = gcn_forward_padded(adj_p, x_p, wt_p, b_p)
    # When stacking layers, keep out_p in the padded domain; slice once at the end.
    return out_p[:n, :out_feats]


if __name__ == "__main__":
    key = jax.random.PRNGKey(0)
    k_edges, k_feat, k_w, k_b = jax.random.split(key, 4)

    # Karate-club-sized synthetic graph (34 nodes), deterministic.
    N = 34
    in_feats = 16
    out_feats = 8

    # Random directed adjacency (A[dst, src] = 1 when edge src->dst exists).
    adj = (jax.random.uniform(k_edges, (N, N)) < 0.15).astype(jnp.float32)

    # Node features.
    x = jax.random.normal(k_feat, (N, in_feats), dtype=jnp.float32)

    # nn.Linear(in_feats, out_feats) parameters, PyTorch-style uniform init.
    bound = 1.0 / (in_feats ** 0.5)
    w = jax.random.uniform(k_w, (out_feats, in_feats),
                           minval=-bound, maxval=bound, dtype=jnp.float32)
    b = jax.random.uniform(k_b, (out_feats,),
                           minval=-bound, maxval=bound, dtype=jnp.float32)

    # One-time graph / layer prep (hoisted out of the per-forward path).
    adj_p = init_adjacency(adj)
    wt_p, b_p = init_gcn_params(w, b)

    out = gcn_layer(adj_p, x, wt_p, b_p, n=N, out_feats=out_feats)
    out = jax.block_until_ready(out)

    # Pure-JAX reference of the original (un-reassociated) semantics.
    ref = (adj @ x) @ w.T + b
    assert out.shape == (N, out_feats)
    assert jnp.allclose(out, ref, atol=1e-5, rtol=1e-5)

    print("KERNEL_OK")
</pallas_src>

<mosaic_0001>
module attributes {stable_mosaic.version = 11 : i64} {
  func.func @gcn_kernel(%arg0: i32, %arg1: memref<128x128xf32, #tpu.memory_space<vmem>>, %arg2: memref<128x128xf32, #tpu.memory_space<vmem>>, %arg3: memref<128x128xf32, #tpu.memory_space<vmem>>, %arg4: memref<1x128xf32, #tpu.memory_space<vmem>>, %arg5: memref<128x128xf32, #tpu.memory_space<vmem>>) attributes {dimension_semantics = [#tpu.dimension_semantics<parallel>], iteration_bounds = array<i64: 1>, scalar_prefetch = 0 : i64, scratch_operands = 0 : i64, tpu.core_type = #tpu.core_type<tc>, window_params = [{transform_indices = @transform_0, window_bounds = array<i64: 128, 128>}, {pipeline_mode = #tpu.pipeline_mode<synchronous>, transform_indices = @transform_1, window_bounds = array<i64: 128, 128>}, {pipeline_mode = #tpu.pipeline_mode<synchronous>, transform_indices = @transform_2, window_bounds = array<i64: 128, 128>}, {pipeline_mode = #tpu.pipeline_mode<synchronous>, transform_indices = @transform_3, window_bounds = array<i64: 1, 128>}, {transform_indices = @transform_4, window_bounds = array<i64: 128, 128>}]} {
    %c0 = arith.constant 0 : index
    %c0_0 = arith.constant 0 : index
    %0 = vector.load %arg2[%c0, %c0_0] : memref<128x128xf32, #tpu.memory_space<vmem>>, vector<128x128xf32>
    %c0_1 = arith.constant 0 : index
    %c0_2 = arith.constant 0 : index
    %1 = vector.load %arg3[%c0_1, %c0_2] : memref<128x128xf32, #tpu.memory_space<vmem>>, vector<128x128xf32>
    %cst = arith.constant dense<0.000000e+00> : vector<128x128xf32>
    %2 = tpu.matmul %0, %1, %cst {dimension_numbers = #tpu.dot_dimension_numbers<[1], [0], [0], [1], [0, 0, 1, 1], [], []>} : vector<128x128xf32>, vector<128x128xf32>, vector<128x128xf32> -> vector<128x128xf32>
    %c0_3 = arith.constant 0 : index
    %c0_4 = arith.constant 0 : index
    %3 = vector.load %arg1[%c0_3, %c0_4] : memref<128x128xf32, #tpu.memory_space<vmem>>, vector<128x128xf32>
    %cst_5 = arith.constant dense<0.000000e+00> : vector<128x128xf32>
    %4 = tpu.matmul %3, %2, %cst_5 {dimension_numbers = #tpu.dot_dimension_numbers<[1], [0], [0], [1], [0, 0, 1, 1], [], []>} : vector<128x128xf32>, vector<128x128xf32>, vector<128x128xf32> -> vector<128x128xf32>
    %c0_6 = arith.constant 0 : index
    %c0_7 = arith.constant 0 : index
    %5 = vector.load %arg4[%c0_6, %c0_7] : memref<1x128xf32, #tpu.memory_space<vmem>>, vector<1x128xf32>
    %6 = vector.broadcast %5 : vector<1x128xf32> to vector<128x128xf32>
    %7 = arith.addf %4, %6 : vector<128x128xf32>
    %c0_8 = arith.constant 0 : index
    %c0_9 = arith.constant 0 : index
    %8 = vector.load %arg5[%c0_8, %c0_9] : memref<128x128xf32, #tpu.memory_space<vmem>>, vector<128x128xf32>
    tpu.vector_store %arg5[%c0_8, %c0_9], %7 {strides = array<i32>} : memref<128x128xf32, #tpu.memory_space<vmem>>, vector<128x128xf32>,
    return
  }
  func.func @transform_0(%arg0: i32) -> (i32, i32) {
    %c0_i32 = arith.constant 0 : i32
    %c0_i32_0 = arith.constant 0 : i32
    return %arg0, %c0_i32 : i32, i32
  }
  func.func @transform_1(%arg0: i32) -> (i32, i32) {
    %c0_i32 = arith.constant 0 : i32
    %c0_i32_0 = arith.constant 0 : i32
    %c0_i32_1 = arith.constant 0 : i32
    return %c0_i32, %c0_i32_0 : i32, i32
  }
  func.func @transform_2(%arg0: i32) -> (i32, i32) {
    %c0_i32 = arith.constant 0 : i32
    %c0_i32_0 = arith.constant 0 : i32
    %c0_i32_1 = arith.constant 0 : i32
    return %c0_i32, %c0_i32_0 : i32, i32
  }
  func.func @transform_3(%arg0: i32) -> (i32, i32) {
    %c0_i32 = arith.constant 0 : i32
    %c0_i32_0 = arith.constant 0 : i32
    %c0_i32_1 = arith.constant 0 : i32
    return %c0_i32, %c0_i32_0 : i32, i32
  }
  func.func @transform_4(%arg0: i32) -> (i32, i32) {
    %c0_i32 = arith.constant 0 : i32
    %c0_i32_0 = arith.constant 0 : i32
    return %arg0, %c0_i32 : i32, i32
  }
}

</mosaic_0001>

<bundles_post_ra>
// kernel: gcn_layer.2
= control target key start
LH: loop header
LB: loop body
LE: loop exit
PB: predicated region body
PF: predicated region fallthrough
CT: control target
= control target key end

     0   :  { %s603_s0 = inlined_call_operand.hbm [shape: f32[128,128], index: 0, kind: input, shape index: {}]   ;;  %s604_s1 = inlined_call_operand.hbm [shape: f32[128,128], index: 1, kind: input, shape index: {}]   ;;  %s605_s2 = inlined_call_operand.vmem [shape: f32[1,128], index: 2, kind: input, shape index: {}]   ;;  %s606_s3 = inlined_call_operand.vmem [shape: f32[34,16], index: 3, kind: input, shape index: {}]   ;;  %s607_s4 = inlined_call_operand.<no memory space> [shape: f32[], index: 4, kind: input, shape index: {}]   ;;  %s608_s5 = inlined_call_operand.vmem [shape: f32[128,128], index: 5, kind: output, shape index: {}]  }
   0x1   :  { %v507_v0 = vstv %s607_s4 }
   0x2   :  { %11 = vsyncpa [#allocation8], 0  ;;  %s17_s22 = sshll.u32 %s603_s0, 4  ;;  %s18_s22 = int_to_ptr.hbm [resolvable:$true] %s17_s22 }
   0x3   :  { %12 = vsyncpa [#allocation10], 0  ;;  %s470_s23 = smov [#allocation7]   ;;  %s32_s27 = sshll.u32 %s604_s1, 4  ;;  %s33_s27 = int_to_ptr.hbm [resolvable:$true] %s32_s27 }
   0x4   :  { %s19_s24 = sshll.u32 %s470_s23, 4  ;;  %s471_s28 = smov 128   ;;  %s20_s24 = int_to_ptr.vmem [resolvable:$true] %s19_s24 }
   0x5   :  { %s472_s29 = smov 8   ;;  %s473_s4 = smov [#allocation9]  }
   0x6   :  { %25 = dma.hbm_to_vmem [thread:$0]  %s18_s22, 2048, %s20_s24, [#allocation8], %s471_s28, %s471_s28, %s472_s29  }
   0x7   :  { %s34_s30 = sshll.u32 %s473_s4, 4  ;;  %s35_s30 = int_to_ptr.vmem [resolvable:$true] %s34_s30 }
   0x8   :  { %40 = dma.hbm_to_vmem [thread:$0]  %s33_s27, 2048, %s35_s30, [#allocation10], %s471_s28, %s471_s28, %s472_s29  }
   0x9   :  { %466 = dma.done.wait [#allocation8], 2048  }
   0xa   :  { %467 = vsyncadd [#allocation8], 4294965248 }
   0xb   :  { %468 = dma.done.wait [#allocation10], 2048  }
   0xc   :  { %469 = vsyncadd [#allocation10], 4294965248  ;;  %v204_v1 = vld [vmem:[#allocation9 + $0x78] sm:$0xff]  ;;  %v203_v2 = vld [vmem:[#allocation9 + $0x70] sm:$0xff]  ;;  %v57_v12 = vlaneseq }
   0xd   :  { %381 = vmatpush.msra.mxu2 %v204_v1  ;;  %205 = vmatpush.msra.mxu0 %v204_v1  ;;  %v202_v3 = vld [vmem:[#allocation9 + $0x68] sm:$0xff]  ;;  %v201_v4 = vld [vmem:[#allocation9 + $0x60] sm:$0xff]  ;;  %v200_v5 = vld [vmem:[#allocation9 + $0x58] sm:$0xff] }
   0xe   :  { %v199_v6 = vld [vmem:[#allocation9 + $0x50] sm:$0xff]  ;;  %v198_v7 = vld [vmem:[#allocation9 + $0x48] sm:$0xff]  ;;  %v197_v8 = vld [vmem:[#allocation9 + $0x40] sm:$0xff]  ;;  %v58_v15 = vand.u32 127, %v57_v12  ;;  %v116_v25 = vshrl.u32 %v57_v12, 7 }
   0xf   :  { %382 = vmatpush.msra.mxu2 %v203_v2  ;;  %206 = vmatpush.msra.mxu0 %v203_v2  ;;  %v196_v9 = vld [vmem:[#allocation9 + $0x38] sm:$0xff]  ;;  %v195_v10 = vld [vmem:[#allocation9 + $0x30] sm:$0xff]  ;;  %v194_v11 = vld [vmem:[#allocation9 + $0x28] sm:$0xff] }
  0x10   :  { %v193_v13 = vld [vmem:[#allocation9 + $0x20] sm:$0xff]  ;;  %v192_v14 = vld [vmem:[#allocation9 + $0x18] sm:$0xff]  ;;  %v191_v16 = vld [vmem:[#allocation9 + $0x10] sm:$0xff]  ;;  %vm60_vm0 = vcmp.lt.s32.totalorder %v58_v15, 16  ;;  %v117_v27 = vadd.s32 32, %v116_v25 }
  0x11   :  { %383 = vmatpush.msra.mxu2 %v202_v3  ;;  %207 = vmatpush.msra.mxu0 %v202_v3  ;;  %v190_v17 = vld [vmem:[#allocation9 + $0x8] sm:$0xff]  ;;  %v51_v18 = vld [vmem:[%s606_s3] sm:$0xff]  ;;  %v378_v23 = vld [vmem:[%s606_s3 + $0x10] sm:$0xff] }
  0x12   :  { %v189_v19 = vld [vmem:[#allocation9] sm:$0xff]  ;;  %v61_v20 = vsel %vm60_vm0, %v51_v18, %v507_v0  ;;  %v377_v21 = vld [vmem:[%s606_s3 + $0x8] sm:$0xff]  ;;  %v92_v24 = vsel %vm60_vm0, %v378_v23, %v507_v0  ;;  %v379_v26 = vld [vmem:[%s606_s3 + $0x18] sm:$0xff]  ;;  %vm118_vm1 = vcmp.lt.s32.totalorder %v117_v27, 34 }
  0x13   :  { %384 = vmatpush.msra.mxu2 %v201_v4  ;;  %208 = vmatpush.msra.mxu0 %v201_v4  ;;  %v76_v22 = vsel %vm60_vm0, %v377_v21, %v507_v0  ;;  %v108_v28 = vsel %vm60_vm0, %v379_v26, %v507_v0  ;;  %v380_v29 = vld [vmem:[%s606_s3 + $0x20] sm:$0xff]  ;;  %v279_v50 = vld [vmem:[#allocation7 + $0x48] sm:$0xff]  ;;  %v280_v52 = vld [vmem:[#allocation7 + $0x50] sm:$0xff] }
  0x14   :  { %v119_v30 = vsel %vm118_vm1, %v380_v29, %v507_v0  ;;  %v278_v48 = vld [vmem:[#allocation7 + $0x40] sm:$0xff]  ;;  %v271_v51 = vld [vmem:[#allocation7 + $0x8] sm:$0xff]  ;;  %v272_v53 = vld [vmem:[#allocation7 + $0x10] sm:$0xff] }
  0x15   :  { %385 = vmatpush.msra.mxu2 %v200_v5  ;;  %209 = vmatpush.msra.mxu0 %v200_v5  ;;  %v124_v31 = vsel %vm60_vm0, %v119_v30, %v507_v0  ;;  %v270_v49 = vld [vmem:[#allocation7] sm:$0xff]  ;;  %v281_v54 = vld [vmem:[#allocation7 + $0x58] sm:$0xff]  ;;  %v283_v58 = vld [vmem:[#allocation7 + $0x68] sm:$0xff] }
  0x16   :  { %v273_v55 = vld [vmem:[#allocation7 + $0x18] sm:$0xff]  ;;  %v282_v56 = vld [vmem:[#allocation7 + $0x60] sm:$0xff]  ;;  %v275_v59 = vld [vmem:[#allocation7 + $0x28] sm:$0xff] }
  0x17   :  { %386 = vmatpush.msra.mxu2 %v199_v6  ;;  %210 = vmatpush.msra.mxu0 %v199_v6  ;;  %v274_v57 = vld [vmem:[#allocation7 + $0x20] sm:$0xff]  ;;  %v284_v60 = vld [vmem:[#allocation7 + $0x70] sm:$0xff]  ;;  %v285_v62 = vld [vmem:[#allocation7 + $0x78] sm:$0xff] }
  0x18   :  { %v276_v61 = vld [vmem:[#allocation7 + $0x30] sm:$0xff]  ;;  %v277_v63 = vld [vmem:[#allocation7 + $0x38] sm:$0xff] }
  0x19   :  { %387 = vmatpush.msra.mxu2 %v198_v7  ;;  %211 = vmatpush.msra.mxu0 %v198_v7 }
  0x1b   :  { %388 = vmatpush.msra.mxu2 %v197_v8  ;;  %212 = vmatpush.msra.mxu0 %v197_v8 }
  0x1d   :  { %389 = vmatpush.msra.mxu2 %v196_v9  ;;  %213 = vmatpush.msra.mxu0 %v196_v9 }
  0x1f   :  { %390 = vmatpush.msra.mxu2 %v195_v10  ;;  %214 = vmatpush.msra.mxu0 %v195_v10 }
  0x21   :  { %391 = vmatpush.msra.mxu2 %v194_v11  ;;  %215 = vmatpush.msra.mxu0 %v194_v11 }
  0x23   :  { %392 = vmatpush.msra.mxu2 %v193_v13  ;;  %216 = vmatpush.msra.mxu0 %v193_v13 }
  0x25   :  { %393 = vmatpush.msra.mxu2 %v192_v14  ;;  %217 = vmatpush.msra.mxu0 %v192_v14 }
  0x27   :  { %394 = vmatpush.msra.mxu2 %v191_v16  ;;  %218 = vmatpush.msra.mxu0 %v191_v16 }
  0x29   :  { %395 = vmatpush.msra.mxu2 %v190_v17  ;;  %219 = vmatpush.msra.mxu0 %v190_v17 }
  0x2b   :  { %396 = vmatpush.msra.mxu2 %v189_v19  ;;  %220 = vmatpush.msra.mxu0 %v189_v19 }
  0x2c   :  { %245 = vmatmul.f32.vlgmr.msra.gmra.mxu2 %v507_v0  ;;  %221 = vmatmul.f32.vlgmr.msra.gmra.mxu0 %v61_v20 }
  0x34   :  { %248 = vmatmul.f32.gmra.mxu2 %v507_v0  ;;  %224 = vmatmul.f32.gmra.mxu0 %v76_v22 }
  0x3c   :  { %251 = vmatmul.f32.gmra.mxu2 %v507_v0  ;;  %227 = vmatmul.f32.gmra.mxu0 %v92_v24 }
  0x44   :  { %254 = vmatmul.f32.gmra.mxu2 %v507_v0  ;;  %230 = vmatmul.f32.gmra.mxu0 %v108_v28 }
  0x4c   :  { %257 = vmatmul.f32.gmra.mxu2 %v507_v0  ;;  %233 = vmatmul.f32.gmra.mxu0 %v124_v31 }
  0x54   :  { %260 = vmatmul.f32.gmra.mxu2 %v507_v0  ;;  %236 = vmatmul.f32.gmra.mxu0 %v507_v0 }
  0x5c   :  { %263 = vmatmul.f32.gmra.mxu2 %v507_v0  ;;  %239 = vmatmul.f32.gmra.mxu0 %v507_v0 }
  0x64   :  { %266 = vmatmul.f32.gmra.mxu2 %v507_v0  ;;  %242 = vmatmul.f32.gmra.mxu0 %v507_v0  ;;  %v417_v0 = vld [vmem:[%s605_s2] ss:$0 sm:$0xff] }
  0xa9   :  { %v222_v33 = vpop.f32.mrf.mxu0 }
  0xaf   :  { %v246_v32 = vpop.f32.mrf.mxu2 }
  0xb1   :  { %v225_v35 = vpop.f32.mrf.mxu0 }
  0xb7   :  { %v249_v34 = vpop.f32.mrf.mxu2 }
  0xb9   :  { %v228_v37 = vpop.f32.mrf.mxu0 }
  0xbf   :  { %v252_v36 = vpop.f32.mrf.mxu2 }
  0xc1   :  { %v231_v39 = vpop.f32.mrf.mxu0 }
  0xc7   :  { %v255_v38 = vpop.f32.mrf.mxu2 }
  0xc9   :  { %v234_v42 = vpop.f32.mrf.mxu0 }
  0xcf   :  { %v258_v40 = vpop.f32.mrf.mxu2 }
  0xd1   :  { %v237_v44 = vpop.f32.mrf.mxu0 }
  0xd7   :  { %v261_v41 = vpop.f32.mrf.mxu2 }
  0xd9   :  { %v240_v46 = vpop.f32.mrf.mxu0 }
  0xdf   :  { %v264_v43 = vpop.f32.mrf.mxu2 }
  0xe1   :  { %v243_v47 = vpop.f32.mrf.mxu0 }
  0xe7   :  { %v267_v45 = vpop.f32.mrf.mxu2 }
  0xe8   :  { %290 = vmatpush.msra.mxu1 %v267_v45  ;;  %397 = vmatpush.msra.mxu3 %v267_v45 }
  0xea   :  { %291 = vmatpush.msra.mxu1 %v264_v43  ;;  %398 = vmatpush.msra.mxu3 %v264_v43 }
  0xec   :  { %292 = vmatpush.msra.mxu1 %v261_v41  ;;  %399 = vmatpush.msra.mxu3 %v261_v41 }
  0xee   :  { %293 = vmatpush.msra.mxu1 %v258_v40  ;;  %400 = vmatpush.msra.mxu3 %v258_v40 }
  0xf0   :  { %294 = vmatpush.msra.mxu1 %v255_v38  ;;  %401 = vmatpush.msra.mxu3 %v255_v38 }
  0xf2   :  { %295 = vmatpush.msra.mxu1 %v252_v36  ;;  %402 = vmatpush.msra.mxu3 %v252_v36 }
  0xf4   :  { %296 = vmatpush.msra.mxu1 %v249_v34  ;;  %403 = vmatpush.msra.mxu3 %v249_v34 }
  0xf6   :  { %297 = vmatpush.msra.mxu1 %v246_v32  ;;  %404 = vmatpush.msra.mxu3 %v246_v32 }
  0xf8   :  { %298 = vmatpush.msra.mxu1 %v243_v47  ;;  %405 = vmatpush.msra.mxu3 %v243_v47 }
  0xfa   :  { %299 = vmatpush.msra.mxu1 %v240_v46  ;;  %406 = vmatpush.msra.mxu3 %v240_v46 }
  0xfc   :  { %300 = vmatpush.msra.mxu1 %v237_v44  ;;  %407 = vmatpush.msra.mxu3 %v237_v44 }
  0xfe   :  { %301 = vmatpush.msra.mxu1 %v234_v42  ;;  %408 = vmatpush.msra.mxu3 %v234_v42 }
 0x100   :  { %302 = vmatpush.msra.mxu1 %v231_v39  ;;  %409 = vmatpush.msra.mxu3 %v231_v39 }
 0x102   :  { %303 = vmatpush.msra.mxu1 %v228_v37  ;;  %410 = vmatpush.msra.mxu3 %v228_v37 }
 0x104   :  { %304 = vmatpush.msra.mxu1 %v225_v35  ;;  %411 = vmatpush.msra.mxu3 %v225_v35 }
 0x106   :  { %305 = vmatpush.msra.mxu1 %v222_v33  ;;  %412 = vmatpush.msra.mxu3 %v222_v33 }
 0x107   :  { %330 = vmatmul.f32.vlgmr.msra.gmra.mxu3 %v278_v48  ;;  %306 = vmatmul.f32.vlgmr.msra.gmra.mxu1 %v270_v49 }
 0x10f   :  { %333 = vmatmul.f32.gmra.mxu3 %v279_v50  ;;  %309 = vmatmul.f32.gmra.mxu1 %v271_v51 }
 0x117   :  { %336 = vmatmul.f32.gmra.mxu3 %v280_v52  ;;  %312 = vmatmul.f32.gmra.mxu1 %v272_v53 }
 0x11f   :  { %339 = vmatmul.f32.gmra.mxu3 %v281_v54  ;;  %315 = vmatmul.f32.gmra.mxu1 %v273_v55 }
 0x127   :  { %342 = vmatmul.f32.gmra.mxu3 %v282_v56  ;;  %318 = vmatmul.f32.gmra.mxu1 %v274_v57 }
 0x12f   :  { %345 = vmatmul.f32.gmra.mxu3 %v283_v58  ;;  %321 = vmatmul.f32.gmra.mxu1 %v275_v59 }
 0x137   :  { %348 = vmatmul.f32.gmra.mxu3 %v284_v60  ;;  %324 = vmatmul.f32.gmra.mxu1 %v276_v61 }
 0x13f   :  { %351 = vmatmul.f32.gmra.mxu3 %v285_v62  ;;  %327 = vmatmul.f32.gmra.mxu1 %v277_v63 }
 0x184   :  { %v307_v1 = vpop.f32.mrf.mxu1 }
 0x185   :  { %v308_v2 = vadd.f32 %v417_v0, %v307_v1 }
 0x187   :  { %355 = vst [vmem:[%s608_s5] sm:$0xff] %v308_v2 }
 0x18a   :  { %v331_v3 = vpop.f32.mrf.mxu3 }
 0x18b   :  { %v332_v4 = vadd.f32 %v417_v0, %v331_v3 }
 0x18c   :  { %v310_v5 = vpop.f32.mrf.mxu1 }
 0x18d   :  { %363 = vst [vmem:[%s608_s5 + $0x40] sm:$0xff] %v332_v4  ;;  %v311_v6 = vadd.f32 %v417_v0, %v310_v5 }
 0x18f   :  { %356 = vst [vmem:[%s608_s5 + $0x8] sm:$0xff] %v311_v6 }
 0x192   :  { %v334_v7 = vpop.f32.mrf.mxu3 }
 0x193   :  { %v335_v8 = vadd.f32 %v417_v0, %v334_v7 }
 0x194   :  { %v313_v9 = vpop.f32.mrf.mxu1 }
 0x195   :  { %364 = vst [vmem:[%s608_s5 + $0x48] sm:$0xff] %v335_v8  ;;  %v314_v10 = vadd.f32 %v417_v0, %v313_v9 }
 0x197   :  { %357 = vst [vmem:[%s608_s5 + $0x10] sm:$0xff] %v314_v10 }
 0x19a   :  { %v337_v11 = vpop.f32.mrf.mxu3 }
 0x19b   :  { %v338_v12 = vadd.f32 %v417_v0, %v337_v11 }
 0x19c   :  { %v316_v13 = vpop.f32.mrf.mxu1 }
 0x19d   :  { %365 = vst [vmem:[%s608_s5 + $0x50] sm:$0xff] %v338_v12  ;;  %v317_v14 = vadd.f32 %v417_v0, %v316_v13 }
 0x19f   :  { %358 = vst [vmem:[%s608_s5 + $0x18] sm:$0xff] %v317_v14 }
 0x1a2   :  { %v340_v15 = vpop.f32.mrf.mxu3 }
 0x1a3   :  { %v341_v16 = vadd.f32 %v417_v0, %v340_v15 }
 0x1a4   :  { %v319_v17 = vpop.f32.mrf.mxu1 }
 0x1a5   :  { %366 = vst [vmem:[%s608_s5 + $0x58] sm:$0xff] %v341_v16  ;;  %v320_v18 = vadd.f32 %v417_v0, %v319_v17 }
 0x1a7   :  { %359 = vst [vmem:[%s608_s5 + $0x20] sm:$0xff] %v320_v18 }
 0x1aa   :  { %v343_v19 = vpop.f32.mrf.mxu3 }
 0x1ab   :  { %v344_v20 = vadd.f32 %v417_v0, %v343_v19 }
 0x1ac   :  { %v322_v21 = vpop.f32.mrf.mxu1 }
 0x1ad   :  { %367 = vst [vmem:[%s608_s5 + $0x60] sm:$0xff] %v344_v20  ;;  %v323_v22 = vadd.f32 %v417_v0, %v322_v21 }
 0x1af   :  { %360 = vst [vmem:[%s608_s5 + $0x28] sm:$0xff] %v323_v22 }
 0x1b2   :  { %v346_v23 = vpop.f32.mrf.mxu3 }
 0x1b3   :  { %v347_v24 = vadd.f32 %v417_v0, %v346_v23 }
 0x1b4   :  { %v325_v25 = vpop.f32.mrf.mxu1 }
 0x1b5   :  { %368 = vst [vmem:[%s608_s5 + $0x68] sm:$0xff] %v347_v24  ;;  %v326_v26 = vadd.f32 %v417_v0, %v325_v25 }
 0x1b7   :  { %361 = vst [vmem:[%s608_s5 + $0x30] sm:$0xff] %v326_v26 }
 0x1ba   :  { %v349_v27 = vpop.f32.mrf.mxu3 }
 0x1bb   :  { %v350_v28 = vadd.f32 %v417_v0, %v349_v27 }
 0x1bc   :  { %v328_v29 = vpop.f32.mrf.mxu1 }
 0x1bd   :  { %369 = vst [vmem:[%s608_s5 + $0x70] sm:$0xff] %v350_v28  ;;  %v329_v30 = vadd.f32 %v417_v0, %v328_v29 }
 0x1bf   :  { %362 = vst [vmem:[%s608_s5 + $0x38] sm:$0xff] %v329_v30 }
 0x1c2   :  { %v352_v31 = vpop.f32.mrf.mxu3 }
 0x1c3   :  { %v353_v32 = vadd.f32 %v417_v0, %v352_v31 }
 0x1c5   :  { %370 = vst [vmem:[%s608_s5 + $0x78] sm:$0xff] %v353_v32 }
 0x1c6   :  { %375 = vsyncpa [#allocation8], 1 }
 0x1c7   :  { %376 = vsyncpa [#allocation10], 1 }

</bundles_post_ra>
